<compile_context>
chip_gen: v6e
topology: v6e:2x2x1
jax: 0.10.0
libtpu: 0.0.40
codegen_flags: <defaults>
</compile_context>

<pallas_src>
import jax
import jax.numpy as jnp
from jax import lax
from jax.experimental import pallas as pl
from jax.experimental.pallas import tpu as pltpu

BN_EPS = 0.001


# ----------------------------------------------------------------------------- kernels
def conv_stats_kernel(x_ref, xh_ref, w_ref, y_ref, sum_ref, sq_ref):
    """Per-tile transposed-conv (parity-packed channels) + streaming BN statistics.

    x_ref : (1, TH, W, Cin)      current H tile (NHWC)
    xh_ref: (1, 1,  W, Cin)      halo row (row right below the tile; garbage on last tile)
    w_ref : (4*Cin, 4*Cout)      packed weights, rows = [shsw | sh | sw | id], cols = [ee|eo|oe|oo]
    y_ref : (1, TH, W, 4*Cout)   conv output tile, channels = [ee|eo|oe|oo]
    sum_ref/sq_ref: (1, 1, 4*Cout)  per-channel sum / sum-of-squares, accumulated over H tiles
    """
    h = pl.program_id(1)
    last_h = pl.num_programs(1) - 1

    _, TH, W, Cin = x_ref.shape
    C4 = y_ref.shape[-1]

    x = x_ref[...]                                   # (1, TH, W, Cin)
    # Halo row: real data except on the last H tile (conv boundary -> zeros).
    halo = xh_ref[...] * (h != last_h).astype(x.dtype)

    x_ext = jnp.concatenate([x, halo], axis=1)        # (1, TH+1, W, Cin)
    zcol = jnp.zeros((1, TH + 1, 1, Cin), x.dtype)
    x_ext_w = jnp.concatenate([x_ext[:, :, 1:, :], zcol], axis=2)   # shifted by +1 in W

    def flat(a):                                      # (1, TH, W, Cin) -> (TH*W, Cin)
        return a.reshape(TH * W, Cin)

    w = w_ref[...]                                    # (4*Cin, 4*Cout)
    # 4 MXU pushes (one per shifted input view), output already parity-packed.
    yf = jnp.dot(flat(x_ext_w[:, 1:]), w[0 * Cin:1 * Cin],
                 preferred_element_type=jnp.float32)            # shift down+right
    yf += jnp.dot(flat(x_ext[:, 1:]), w[1 * Cin:2 * Cin],
                  preferred_element_type=jnp.float32)           # shift down
    yf += jnp.dot(flat(x_ext_w[:, :TH]), w[2 * Cin:3 * Cin],
                  preferred_element_type=jnp.float32)           # shift right
    yf += jnp.dot(flat(x_ext[:, :TH]), w[3 * Cin:4 * Cin],
                  preferred_element_type=jnp.float32)           # identity

    y_ref[...] = yf.reshape(1, TH, W, C4).astype(y_ref.dtype)

    # Streaming BN statistics (sum / sum-of-squares per packed channel).
    @pl.when(h == 0)
    def _():
        sum_ref[...] = jnp.zeros_like(sum_ref)
        sq_ref[...] = jnp.zeros_like(sq_ref)

    sum_ref[...] += jnp.sum(yf, axis=0).reshape(1, 1, C4)
    sq_ref[...] += jnp.sum(yf * yf, axis=0).reshape(1, 1, C4)


def bn_relu_kernel(y_ref, scale_ref, shift_ref, o_ref):
    """Apply per-channel scale/shift (BatchNorm) + ReLU to a conv-output tile."""
    c4 = y_ref.shape[-1]
    sc = scale_ref[...].reshape(1, 1, 1, c4)
    sh = shift_ref[...].reshape(1, 1, 1, c4)
    o_ref[...] = jnp.maximum(y_ref[...] * sc + sh, 0.0).astype(o_ref.dtype)


# ----------------------------------------------------------------------------- wrapper
def _largest_divisor_leq(n, cap):
    cap = max(1, min(n, cap))
    for t in range(cap, 0, -1):
        if n % t == 0:
            return t
    return 1


def _pack_weights(w_hwio, cin, cout, dtype):
    """(3,3,Cin,Cout) HWIO -> (4*Cin, 4*Cout): rows [shsw|sh|sw|id], cols [ee|eo|oe|oo]."""
    w = w_hwio.astype(dtype)
    C = cout
    Wb = jnp.zeros((4 * cin, 4 * C), dtype)
    # ee = id @ w[1,1]
    Wb = Wb.at[3 * cin:4 * cin, 0 * C:1 * C].set(w[1, 1])
    # eo = sw @ w[1,0] + id @ w[1,2]
    Wb = Wb.at[2 * cin:3 * cin, 1 * C:2 * C].set(w[1, 0])
    Wb = Wb.at[3 * cin:4 * cin, 1 * C:2 * C].set(w[1, 2])
    # oe = sh @ w[0,1] + id @ w[2,1]
    Wb = Wb.at[1 * cin:2 * cin, 2 * C:3 * C].set(w[0, 1])
    Wb = Wb.at[3 * cin:4 * cin, 2 * C:3 * C].set(w[2, 1])
    # oo = shsw @ w[0,0] + sh @ w[0,2] + sw @ w[2,0] + id @ w[2,2]
    Wb = Wb.at[0 * cin:1 * cin, 3 * C:4 * C].set(w[0, 0])
    Wb = Wb.at[1 * cin:2 * cin, 3 * C:4 * C].set(w[0, 2])
    Wb = Wb.at[2 * cin:3 * cin, 3 * C:4 * C].set(w[2, 0])
    Wb = Wb.at[3 * cin:4 * cin, 3 * C:4 * C].set(w[2, 2])
    return Wb


def upsampler_block(x_nchw, w_hwio, b, gamma, beta, tile_h=None):
    """UpsamplerBlock forward.  x_nchw: (N, Cin, H, W) -> (N, Cout, 2H, 2W)."""
    del b  # Bias before training-mode BatchNorm is absorbed by the batch mean (exact no-op).

    N, Cin, H, W = x_nchw.shape
    Cout = w_hwio.shape[-1]
    C4 = 4 * Cout
    dt = x_nchw.dtype

    # NHWC input (channels on the lane axis).
    x = jnp.transpose(x_nchw, (0, 2, 3, 1))
    Wb = _pack_weights(w_hwio, Cin, Cout, dt)

    # H tile: largest divisor of H within a VMEM budget (or the requested cap).
    if tile_h is None:
        row_bytes = max(1, W * C4 * 4)
        tile_h = max(1, (4 << 20) // row_bytes)       # ~4 MiB for the output tile
    TH = _largest_divisor_leq(H, tile_h)
    nH = H // TH

    # ---- pass 1: transposed conv (parity-packed channels) + streaming statistics
    y_conv, sums, sumsq = pl.pallas_call(
        conv_stats_kernel,
        grid=(N, nH),
        in_specs=[
            pl.BlockSpec((1, TH, W, Cin), lambda n, h: (n, h, 0, 0)),
            # halo row just below the tile (clamped; masked to zero on the last tile)
            pl.BlockSpec((1, 1, W, Cin),
                         lambda n, h: (n, jnp.minimum((h + 1) * TH, H - 1), 0, 0)),
            pl.BlockSpec((4 * Cin, C4), lambda n, h: (0, 0)),
        ],
        out_specs=[
            pl.BlockSpec((1, TH, W, C4), lambda n, h: (n, h, 0, 0)),
            pl.BlockSpec((1, 1, C4), lambda n, h: (n, 0, 0)),
            pl.BlockSpec((1, 1, C4), lambda n, h: (n, 0, 0)),
        ],
        out_shape=(
            jax.ShapeDtypeStruct((N, H, W, C4), jnp.float32),
            jax.ShapeDtypeStruct((N, 1, C4), jnp.float32),
            jax.ShapeDtypeStruct((N, 1, C4), jnp.float32),
        ),
        compiler_params=pltpu.CompilerParams(
            dimension_semantics=("parallel", "arbitrary")),
    )(x, x, Wb)

    # ---- tiny XLA reduction: global BatchNorm statistics -> per-channel scale/shift
    cnt = jnp.float32(4.0 * N * H * W)                 # = N * 2H * 2W
    total = sums.reshape(N, 4, Cout).sum(axis=(0, 1))
    totsq = sumsq.reshape(N, 4, Cout).sum(axis=(0, 1))
    mean = total / cnt
    var = jnp.maximum(totsq / cnt - mean * mean, 0.0)  # biased (training-mode) variance
    inv = lax.rsqrt(var + BN_EPS)
    scale_c = gamma.astype(jnp.float32) * inv
    shift_c = beta.astype(jnp.float32) - mean * scale_c
    scale4 = jnp.tile(scale_c, 4).reshape(1, C4)
    shift4 = jnp.tile(shift_c, 4).reshape(1, C4)

    # ---- pass 2: BatchNorm apply + ReLU
    y_bn = pl.pallas_call(
        bn_relu_kernel,
        grid=(N, nH),
        in_specs=[
            pl.BlockSpec((1, TH, W, C4), lambda n, h: (n, h, 0, 0)),
            pl.BlockSpec((1, C4), lambda n, h: (0, 0)),
            pl.BlockSpec((1, C4), lambda n, h: (0, 0)),
        ],
        out_specs=pl.BlockSpec((1, TH, W, C4), lambda n, h: (n, h, 0, 0)),
        out_shape=jax.ShapeDtypeStruct((N, H, W, C4), dt),
        compiler_params=pltpu.CompilerParams(
            dimension_semantics=("parallel", "parallel")),
    )(y_conv, scale4, shift4)

    # ---- glue: one reshape + one transpose does BOTH the parity interleave and NCHW.
    # channel layout 4C = (p, q, c) with p = row parity, q = col parity.
    out = (y_bn.reshape(N, H, W, 2, 2, Cout)
           .transpose(0, 5, 1, 3, 2, 4)                # (n, c, i, p, j, q)
           .reshape(N, Cout, 2 * H, 2 * W))
    return out.astype(dt)


# ----------------------------------------------------------------------------- reference
def reference(x_nchw, w_hwio, b, gamma, beta):
    """Pure-JAX reference (ConvTranspose2d == dilated conv with flipped kernel) + BN + ReLU."""
    x = jnp.transpose(x_nchw, (0, 2, 3, 1))
    rhs = w_hwio[::-1, ::-1, :, :]
    y = lax.conv_general_dilated(
        x, rhs, window_strides=(1, 1), padding=((1, 2), (1, 2)),
        lhs_dilation=(2, 2),
        dimension_numbers=("NHWC", "HWIO", "NHWC"),
        precision=lax.Precision.HIGHEST)
    y = y + b
    mean = y.mean(axis=(0, 1, 2))
    var = ((y - mean) ** 2).mean(axis=(0, 1, 2))
    y = (y - mean) / jnp.sqrt(var + BN_EPS) * gamma + beta
    y = jnp.maximum(y, 0.0)
    return jnp.transpose(y, (0, 3, 1, 2))


if __name__ == "__main__":
    N, Cin, Cout, H, W = 2, 4, 8, 16, 16

    key = jax.random.PRNGKey(0)
    k1, k2, k3, k4, k5 = jax.random.split(key, 5)
    x = jax.random.normal(k1, (N, Cin, H, W), jnp.float32)
    # ConvTranspose2d weight is (Cin, Cout, 3, 3) in PyTorch; synthesized directly in HWIO.
    w_hwio = 0.2 * jax.random.normal(k2, (3, 3, Cin, Cout), jnp.float32)
    b = 0.1 * jax.random.normal(k3, (Cout,), jnp.float32)
    gamma = 1.0 + 0.1 * jax.random.normal(k4, (Cout,), jnp.float32)
    beta = 0.1 * jax.random.normal(k5, (Cout,), jnp.float32)

    # tile_h=8 -> 2 H-tiles per image: exercises the halo row and stats accumulation paths.
    out = upsampler_block(x, w_hwio, b, gamma, beta, tile_h=8)
    out = jax.block_until_ready(out)

    ref = jax.block_until_ready(reference(x, w_hwio, b, gamma, beta))
    assert out.shape == (N, Cout, 2 * H, 2 * W), out.shape
    err = float(jnp.max(jnp.abs(out - ref)))
    assert jnp.allclose(out, ref, atol=1e-2, rtol=1e-2), err

    print("KERNEL_OK")
</pallas_src>

<mosaic_0001>
module attributes {stable_mosaic.version = 11 : i64} {
  func.func @conv_stats_kernel(%arg0: i32, %arg1: i32, %arg2: memref<1x8x16x4xf32, #tpu.memory_space<vmem>>, %arg3: memref<1x1x16x4xf32, #tpu.memory_space<vmem>>, %arg4: memref<16x32xf32, #tpu.memory_space<vmem>>, %arg5: memref<1x8x16x32xf32, #tpu.memory_space<vmem>>, %arg6: memref<1x1x32xf32, #tpu.memory_space<vmem>>, %arg7: memref<1x1x32xf32, #tpu.memory_space<vmem>>) attributes {dimension_semantics = [#tpu.dimension_semantics<parallel>, #tpu.dimension_semantics<arbitrary>], iteration_bounds = array<i64: 2, 2>, scalar_prefetch = 0 : i64, scratch_operands = 0 : i64, tpu.core_type = #tpu.core_type<tc>, window_params = [{transform_indices = @transform_0, window_bounds = array<i64: 1, 8, 16, 4>}, {transform_indices = @transform_1, window_bounds = array<i64: 1, 1, 16, 4>}, {pipeline_mode = #tpu.pipeline_mode<synchronous>, transform_indices = @transform_2, window_bounds = array<i64: 16, 32>}, {transform_indices = @transform_3, window_bounds = array<i64: 1, 8, 16, 32>}, {transform_indices = @transform_4, window_bounds = array<i64: 1, 1, 32>}, {transform_indices = @transform_5, window_bounds = array<i64: 1, 1, 32>}]} {
    %c0 = arith.constant 0 : index
    %c0_0 = arith.constant 0 : index
    %c0_1 = arith.constant 0 : index
    %c0_2 = arith.constant 0 : index
    %0 = vector.load %arg2[%c0, %c0_0, %c0_1, %c0_2] : memref<1x8x16x4xf32, #tpu.memory_space<vmem>>, vector<1x8x16x4xf32>
    %c0_3 = arith.constant 0 : index
    %c0_4 = arith.constant 0 : index
    %c0_5 = arith.constant 0 : index
    %c0_6 = arith.constant 0 : index
    %1 = vector.load %arg3[%c0_3, %c0_4, %c0_5, %c0_6] : memref<1x1x16x4xf32, #tpu.memory_space<vmem>>, vector<1x1x16x4xf32>
    %c1_i32 = arith.constant 1 : i32
    %2 = arith.cmpi ne, %arg1, %c1_i32 : i32
    %3 = arith.extui %2 : i1 to i32
    %4 = arith.sitofp %3 : i32 to f32
    %5 = vector.broadcast %4 : f32 to vector<1x1x16x4xf32>
    %6 = arith.mulf %1, %5 : vector<1x1x16x4xf32>
    %7 = tpu.concatenate %0, %6 in 1 : vector<1x8x16x4xf32>, vector<1x1x16x4xf32> -> vector<1x9x16x4xf32>
    %cst = arith.constant 0.000000e+00 : f32
    %8 = vector.broadcast %cst : f32 to vector<1x9x1x4xf32>
    %9 = vector.extract_strided_slice %7 {offsets = [0, 0, 1, 0], sizes = [1, 9, 15, 4], strides = [1, 1, 1, 1]} : vector<1x9x16x4xf32> to vector<1x9x15x4xf32>
    %10 = tpu.concatenate %9, %8 in 2 : vector<1x9x15x4xf32>, vector<1x9x1x4xf32> -> vector<1x9x16x4xf32>
    %c0_7 = arith.constant 0 : index
    %c0_8 = arith.constant 0 : index
    %11 = vector.load %arg4[%c0_7, %c0_8] : memref<16x32xf32, #tpu.memory_space<vmem>>, vector<16x32xf32>
    %12 = vector.extract_strided_slice %10 {offsets = [0, 1, 0, 0], sizes = [1, 8, 16, 4], strides = [1, 1, 1, 1]} : vector<1x9x16x4xf32> to vector<1x8x16x4xf32>
    %13 = vector.shape_cast %12 : vector<1x8x16x4xf32> to vector<128x4xf32>
    %14 = vector.extract_strided_slice %11 {offsets = [0, 0], sizes = [4, 32], strides = [1, 1]} : vector<16x32xf32> to vector<4x32xf32>
    %cst_9 = arith.constant dense<0.000000e+00> : vector<128x32xf32>
    %15 = tpu.matmul %13, %14, %cst_9 {dimension_numbers = #tpu.dot_dimension_numbers<[1], [0], [0], [1], [0, 0, 1, 1], [], []>} : vector<128x4xf32>, vector<4x32xf32>, vector<128x32xf32> -> vector<128x32xf32>
    %16 = vector.extract_strided_slice %7 {offsets = [0, 1, 0, 0], sizes = [1, 8, 16, 4], strides = [1, 1, 1, 1]} : vector<1x9x16x4xf32> to vector<1x8x16x4xf32>
    %17 = vector.shape_cast %16 : vector<1x8x16x4xf32> to vector<128x4xf32>
    %18 = vector.extract_strided_slice %11 {offsets = [4, 0], sizes = [4, 32], strides = [1, 1]} : vector<16x32xf32> to vector<4x32xf32>
    %cst_10 = arith.constant dense<0.000000e+00> : vector<128x32xf32>
    %19 = tpu.matmul %17, %18, %cst_10 {dimension_numbers = #tpu.dot_dimension_numbers<[1], [0], [0], [1], [0, 0, 1, 1], [], []>} : vector<128x4xf32>, vector<4x32xf32>, vector<128x32xf32> -> vector<128x32xf32>
    %20 = arith.addf %15, %19 : vector<128x32xf32>
    %21 = vector.extract_strided_slice %10 {offsets = [0, 0, 0, 0], sizes = [1, 8, 16, 4], strides = [1, 1, 1, 1]} : vector<1x9x16x4xf32> to vector<1x8x16x4xf32>
    %22 = vector.shape_cast %21 : vector<1x8x16x4xf32> to vector<128x4xf32>
    %23 = vector.extract_strided_slice %11 {offsets = [8, 0], sizes = [4, 32], strides = [1, 1]} : vector<16x32xf32> to vector<4x32xf32>
    %cst_11 = arith.constant dense<0.000000e+00> : vector<128x32xf32>
    %24 = tpu.matmul %22, %23, %cst_11 {dimension_numbers = #tpu.dot_dimension_numbers<[1], [0], [0], [1], [0, 0, 1, 1], [], []>} : vector<128x4xf32>, vector<4x32xf32>, vector<128x32xf32> -> vector<128x32xf32>
    %25 = arith.addf %20, %24 : vector<128x32xf32>
    %26 = vector.extract_strided_slice %7 {offsets = [0, 0, 0, 0], sizes = [1, 8, 16, 4], strides = [1, 1, 1, 1]} : vector<1x9x16x4xf32> to vector<1x8x16x4xf32>
    %27 = vector.shape_cast %26 : vector<1x8x16x4xf32> to vector<128x4xf32>
    %28 = vector.extract_strided_slice %11 {offsets = [12, 0], sizes = [4, 32], strides = [1, 1]} : vector<16x32xf32> to vector<4x32xf32>
    %cst_12 = arith.constant dense<0.000000e+00> : vector<128x32xf32>
    %29 = tpu.matmul %27, %28, %cst_12 {dimension_numbers = #tpu.dot_dimension_numbers<[1], [0], [0], [1], [0, 0, 1, 1], [], []>} : vector<128x4xf32>, vector<4x32xf32>, vector<128x32xf32> -> vector<128x32xf32>
    %30 = arith.addf %25, %29 : vector<128x32xf32>
    %31 = vector.shape_cast %30 : vector<128x32xf32> to vector<1x8x16x32xf32>
    %c0_13 = arith.constant 0 : index
    %c0_14 = arith.constant 0 : index
    %c0_15 = arith.constant 0 : index
    %c0_16 = arith.constant 0 : index
    %32 = vector.load %arg5[%c0_13, %c0_14, %c0_15, %c0_16] : memref<1x8x16x32xf32, #tpu.memory_space<vmem>>, vector<1x8x16x32xf32>
    tpu.vector_store %arg5[%c0_13, %c0_14, %c0_15, %c0_16], %31 {strides = array<i32>} : memref<1x8x16x32xf32, #tpu.memory_space<vmem>>, vector<1x8x16x32xf32>,
    %c0_i32 = arith.constant 0 : i32
    %33 = arith.cmpi eq, %arg1, %c0_i32 : i32
    %34 = arith.extui %33 : i1 to i32
    %c0_i32_17 = arith.constant 0 : i32
    %35 = arith.cmpi ne, %34, %c0_i32_17 : i32
    scf.if %35 {
      %cst_32 = arith.constant 0.000000e+00 : f32
      %47 = vector.broadcast %cst_32 : f32 to vector<1x1x32xf32>
      %c0_33 = arith.constant 0 : index
      %c0_34 = arith.constant 0 : index
      %c0_35 = arith.constant 0 : index
      %48 = vector.load %arg6[%c0_33, %c0_34, %c0_35] : memref<1x1x32xf32, #tpu.memory_space<vmem>>, vector<1x1x32xf32>
      tpu.vector_store %arg6[%c0_33, %c0_34, %c0_35], %47 {strides = array<i32>} : memref<1x1x32xf32, #tpu.memory_space<vmem>>, vector<1x1x32xf32>,
      %cst_36 = arith.constant 0.000000e+00 : f32
      %49 = vector.broadcast %cst_36 : f32 to vector<1x1x32xf32>
      %c0_37 = arith.constant 0 : index
      %c0_38 = arith.constant 0 : index
      %c0_39 = arith.constant 0 : index
      %50 = vector.load %arg7[%c0_37, %c0_38, %c0_39] : memref<1x1x32xf32, #tpu.memory_space<vmem>>, vector<1x1x32xf32>
      tpu.vector_store %arg7[%c0_37, %c0_38, %c0_39], %49 {strides = array<i32>} : memref<1x1x32xf32, #tpu.memory_space<vmem>>, vector<1x1x32xf32>,
    } else {
    }
    %c0_18 = arith.constant 0 : index
    %c0_19 = arith.constant 0 : index
    %c0_20 = arith.constant 0 : index
    %36 = vector.load %arg6[%c0_18, %c0_19, %c0_20] : memref<1x1x32xf32, #tpu.memory_space<vmem>>, vector<1x1x32xf32>
    %cst_21 = arith.constant dense<0.000000e+00> : vector<32xf32>
    %37 = vector.multi_reduction <add>, %30, %cst_21 [0] : vector<128x32xf32> to vector<32xf32>
    %38 = vector.shape_cast %37 : vector<32xf32> to vector<1x1x32xf32>
    %39 = arith.addf %36, %38 : vector<1x1x32xf32>
    %c0_22 = arith.constant 0 : index
    %c0_23 = arith.constant 0 : index
    %c0_24 = arith.constant 0 : index
    %40 = vector.load %arg6[%c0_22, %c0_23, %c0_24] : memref<1x1x32xf32, #tpu.memory_space<vmem>>, vector<1x1x32xf32>
    tpu.vector_store %arg6[%c0_22, %c0_23, %c0_24], %39 {strides = array<i32>} : memref<1x1x32xf32, #tpu.memory_space<vmem>>, vector<1x1x32xf32>,
    %c0_25 = arith.constant 0 : index
    %c0_26 = arith.constant 0 : index
    %c0_27 = arith.constant 0 : index
    %41 = vector.load %arg7[%c0_25, %c0_26, %c0_27] : memref<1x1x32xf32, #tpu.memory_space<vmem>>, vector<1x1x32xf32>
    %42 = arith.mulf %30, %30 : vector<128x32xf32>
    %cst_28 = arith.constant dense<0.000000e+00> : vector<32xf32>
    %43 = vector.multi_reduction <add>, %42, %cst_28 [0] : vector<128x32xf32> to vector<32xf32>
    %44 = vector.shape_cast %43 : vector<32xf32> to vector<1x1x32xf32>
    %45 = arith.addf %41, %44 : vector<1x1x32xf32>
    %c0_29 = arith.constant 0 : index
    %c0_30 = arith.constant 0 : index
    %c0_31 = arith.constant 0 : index
    %46 = vector.load %arg7[%c0_29, %c0_30, %c0_31] : memref<1x1x32xf32, #tpu.memory_space<vmem>>, vector<1x1x32xf32>
    tpu.vector_store %arg7[%c0_29, %c0_30, %c0_31], %45 {strides = array<i32>} : memref<1x1x32xf32, #tpu.memory_space<vmem>>, vector<1x1x32xf32>,
    return
  }
  func.func @transform_0(%arg0: i32, %arg1: i32) -> (i32, i32, i32, i32) {
    %c0_i32 = arith.constant 0 : i32
    %c0_i32_0 = arith.constant 0 : i32
    %c0_i32_1 = arith.constant 0 : i32
    return %arg0, %arg1, %c0_i32, %c0_i32_0 : i32, i32, i32, i32
  }
  func.func @transform_1(%arg0: i32, %arg1: i32) -> (i32, i32, i32, i32) {
    %c1_i32 = arith.constant 1 : i32
    %0 = arith.addi %arg1, %c1_i32 : i32
    %c8_i32 = arith.constant 8 : i32
    %1 = arith.muli %0, %c8_i32 : i32
    %c15_i32 = arith.constant 15 : i32
    %2 = arith.minsi %1, %c15_i32 : i32
    %c0_i32 = arith.constant 0 : i32
    %c0_i32_0 = arith.constant 0 : i32
    %c0_i32_1 = arith.constant 0 : i32
    return %arg0, %2, %c0_i32, %c0_i32_0 : i32, i32, i32, i32
  }
  func.func @transform_2(%arg0: i32, %arg1: i32) -> (i32, i32) {
    %c0_i32 = arith.constant 0 : i32
    %c0_i32_0 = arith.constant 0 : i32
    %c0_i32_1 = arith.constant 0 : i32
    return %c0_i32, %c0_i32_0 : i32, i32
  }
  func.func @transform_3(%arg0: i32, %arg1: i32) -> (i32, i32, i32, i32) {
    %c0_i32 = arith.constant 0 : i32
    %c0_i32_0 = arith.constant 0 : i32
    %c0_i32_1 = arith.constant 0 : i32
    return %arg0, %arg1, %c0_i32, %c0_i32_0 : i32, i32, i32, i32
  }
  func.func @transform_4(%arg0: i32, %arg1: i32) -> (i32, i32, i32) {
    %c0_i32 = arith.constant 0 : i32
    %c0_i32_0 = arith.constant 0 : i32
    %c0_i32_1 = arith.constant 0 : i32
    return %arg0, %c0_i32, %c0_i32_0 : i32, i32, i32
  }
  func.func @transform_5(%arg0: i32, %arg1: i32) -> (i32, i32, i32) {
    %c0_i32 = arith.constant 0 : i32
    %c0_i32_0 = arith.constant 0 : i32
    %c0_i32_1 = arith.constant 0 : i32
    return %arg0, %c0_i32, %c0_i32_0 : i32, i32, i32
  }
}

</mosaic_0001>

<bundles_post_ra>
// kernel: tpu_custom_call.1
= control target key start
LH: loop header
LB: loop body
LE: loop exit
PB: predicated region body
PF: predicated region fallthrough
CT: control target
= control target key end

     0   :  { %s2774_s0 = inlined_call_operand.vmem [shape: f32[2,16,16,4], index: 0, kind: input, shape index: {}]   ;;  %s2775_s1 = inlined_call_operand.vmem [shape: f32[2,16,16,4], index: 1, kind: input, shape index: {}]   ;;  %s2776_s2 = inlined_call_operand.vmem [shape: f32[16,32], index: 2, kind: input, shape index: {}]   ;;  %s2777_s3 = inlined_call_operand.hbm [shape: f32[2,16,16,32], index: 3, kind: output, shape index: {0}]   ;;  %s2778_s4 = inlined_call_operand.hbm [shape: f32[2,1,32], index: 4, kind: output, shape index: {1}]   ;;  %s2779_s5 = inlined_call_operand.hbm [shape: f32[2,1,32], index: 5, kind: output, shape index: {2}]  }
   0x1   :  { %2785 = sst [smem:[#allocation12_spill]] %s2774_s0 }
   0x2   :  { %2786 = sst [smem:[#allocation13_spill]] %s2775_s1 }
   0x3   :  { %2787 = sst [smem:[#allocation14_spill]] %s2776_s2 }
   0x4   :  { %11 = vsyncpa [#allocation3], 0 }
   0x5   :  { %13 = vsyncpa [#allocation3 + $0x1], 0 }
   0x6   :  { %14 = vsyncpa [#allocation5], 0 }
   0x7   :  { %16 = vsyncpa [#allocation5 + $0x1], 0  ;;  %s2057_s18 = smov 0   ;;  %s2059_s19 = smov 0  }
   0x8   :  { %s2061_s20 = smov 0   ;;  %s2063_s21 = smov 0  }
   0x9   :  { %s2065_s22 = smov 0   ;;  %s2067_s23 = smov 0  }
   0xa   :  { %s2069_s24 = smov 0   ;;  %s2071_s25 = smov 0  }
   0xb   :  { %s2073_s26 = smov 0   ;;  %s2075_s27 = smov 0  }
   0xc   :  { %s2077_s28 = smov 0  }
   0xd LB: > { %2788 = sst [smem:[#allocation9_spill]] %s2015_s27  ;;  %s2781_s29 = sadd.s32 4294967295, %s2019_s28   ;;  %s2019_s28 = sphi %s2077_s28, %s22_s28   ;;  %s2015_s27 = sphi %s2075_s27, %s2808_s27   ;;  %s2011_s26 = sphi %s2073_s26, %s2816_s26   ;;  %s2007_s25 = sphi %s2071_s25, %s2806_s25   ;;  %s2003_s24 = sphi %s2069_s24, %s2815_s24   ;;  %s1999_s23 = sphi %s2067_s23, %s2814_s23   ;;  %s1995_s22 = sphi %s2065_s22, %s2813_s22   ;;  %s1991_s21 = sphi %s2063_s21, %s2812_s21   ;;  %s1987_s20 = sphi %s2061_s20, %s2811_s20   ;;  %s1983_s19 = sphi %s2059_s19, %s2810_s19   ;;  %s1979_s18 = sphi %s2057_s18, %s2809_s18  }
   0xe   : > { %s2780_s30 = sadd.s32 4294967294, %s2019_s28   ;;  %s31_s6 = sadd.s32 1, %s2011_s26 }
   0xf   : > { %s34_s7 = sadd.s32 1, %s2015_s27  ;;  %p32_p0 = scmp.ge.s32.totalorder %s31_s6, 2 }
  0x10   : > { %s128_s8 = sadd.s32 1, %s1999_s23  ;;  %p138_p1 = scmp.ne.s32.totalorder %s1999_s23, %s1995_s22 }
  0x11   : > { %p2121_p2 = scmp.eq.s32.totalorder %s2781_s29, 3  ;;  %s2818_s6 = smov (%p32_p0, %s31_s6), 0 }
  0x12   : > { %2790 = sst [smem:[#allocation10_spill]] %s2818_s6  ;;  %s2820_s7 = smov (!%p32_p0, %s34_s7), %s2015_s27 }
  0x13   : > { %s124_s10 = ssub.s32 %s2011_s26, %s2818_s6  ;;  %p2132_p3 = por %p2121_p2, %p138_p1 }
  0x14   : > { %p36_p4 = scmp.ge.s32.totalorder %s2820_s7, 2  ;;  %p144_p5 = scmp.ne.s32.totalorder %s1995_s22, %s1991_s21 }
  0x15   : > { %p2140_p6 = scmp.eq.s32.totalorder %s2780_s30, 3  ;;  %s154_s13 = sadd.s32 1, %s1987_s20 }
  0x16   : > { %s2822_s7 = smov (%p36_p4, %s2820_s7), 0  ;;  %p164_p8 = scmp.ne.s32.totalorder %s1987_s20, %s1983_s19 }
  0x17   : > { %2793 = sst [smem:[#allocation11_spill]] %s2822_s7  ;;  %p2149_p7 = por %p2140_p6, %p144_p5 }
  0x18   : > { %s123_s15 = ssub.s32 %s2015_s27, %s2822_s7  ;;  %p170_p9 = scmp.ne.s32.totalorder %s1983_s19, %s1979_s18 }
  0x19   : > { %s125_s16 = sor.u32 %s124_s10, %s123_s15  ;;  %p152_p10 = scmp.eq.s32.totalorder %s123_s15, 0 }
  0x1a   : > { %p126_p11 = scmp.eq.s32.totalorder %s125_s16, 0  ;;  %p2161_p12 = por %p164_p8, %p2121_p2 }
  0x1b   : > { %s2166_s30 = scalar_select %p152_p10, %s1987_s20, %s154_s13  }
  0x1c   : > { %s2169_s29 = scalar_select %p126_p11, %s1999_s23, %s128_s8  }
  0x1d   : > { %p2173_p13 = por %p170_p9, %p2140_p6  ;;  %p1469_p0 = scmp.ge.s32.totalorder %s2019_s28, 1 }
  0x1e   : > { %p252_p1 = scmp.lt.s32.totalorder %s2019_s28, 5 }
  0x1f   : > { %s2796_s6 = scalar_select %p2173_p13, 1, 0 }
  0x20   : > { %p253_p4 = pnand %p1469_p0, %p252_p1 }
  0x21   : > { %s2797_s2 = sld [smem:[#allocation14_spill]] (!%p253_p4)  ;;  %s1471_s8 = sshll.u32 (!%p253_p4), %s2003_s24, 3 }
  0x22   : > { %256 = sbr.rel (%p253_p4) target bundleno = 404 (0x194), region = 32  ;;  %p307_p2 = scmp.lt.s32.totalorder (!%p253_p4), %s2007_s25, 1 }
  0x23   : > { %p309_p5 = scmp.lt.s32.totalorder (!%p253_p4), %s1471_s8, 15  ;;  %s1565_s15 = sadd.s32 (!%p253_p4), 8, %s1471_s8 }
  0x24   : > { %p2198_p6 = scmp.lt.s32.totalorder (!%p253_p4), %s1565_s15, 15  ;;  %s2799_s0 = sld [smem:[#allocation12_spill]] (!%p253_p4) }
  0x25   : > { %p353_p8 = scmp.ne.s32.totalorder (!%p253_p4), %s2003_s24, 1  ;;  %s2800_s1 = sld [smem:[#allocation13_spill]] (!%p253_p4) }
  0x26   : > { %p1550_p9 = scmp.ne.s32.totalorder (!%p253_p4), %s2003_s24, 0 }
  0x27   : > { %v423_v0 = vld [vmem:[%s2797_s2] sm:$0xff]  ;;  %vm460_vm0 = vcmask 1043456   ;;  %v424_v1 = vld [vmem:[%s2797_s2 + $0x8] sm:$0xff]  ;;  %s2194_s16 = scalar_select %p307_p2, %s2007_s25, 1  ;;  %vm427_vm1 = vcmask 31744   ;;  %vm377_vm2 = vcmask 1046528  }
  0x28   : > { %v426_v2 = vrot.slane %v423_v0, 4  ;;  %1661 = vmatprep.subr.msk.mxu1 %vm460_vm0, %v423_v0  ;;  %v964_v3 = vrot.slane %v424_v1, 4  ;;  %s2824_s8 = smov (!%p309_p5, %s1471_s8), 15  ;;  %s2826_s15 = smov (!%p2198_p6, %s1565_s15), 15  ;;  %vm1132_vm3 = vcmask 261120  }
  0x29   : > { %1662 = vmatpush3.msk.msra.mxu1 %vm460_vm0, %v423_v0  ;;  %s1473_s9 = sshll.u32 %s2194_s16, 5  ;;  %s1472_s10 = sshll.u32 %s2824_s8, 1 }
  0x2a   : > { %1635 = vmatprep.subr.msk.mxu0 %vm460_vm0, %v426_v2  ;;  %1713 = vmatprep.subr.msk.mxu1 %vm460_vm0, %v964_v3  ;;  %s313_s13 = sadd.s32 %s1473_s9, %s1472_s10  ;;  %s2828_s15 = smov (!%p2198_p6, %s2826_s15), 15 }
  0x2b   : > { %1636 = vmatpush3.msk.msra.mxu0 %vm460_vm0, %v426_v2  ;;  %s1474_s18 = sshll.u32 %s313_s13, 3  ;;  %s1479_s2 = sshll.u32 %s2828_s15, 1 }
  0x2c   : > { %1687 = vmatprep.subr.msk.mxu0 %vm460_vm0, %v424_v1  ;;  %s2207_s27 = scalar_lea.vmem %s2799_s0, %s1474_s18  ;;  %s327_s7 = sadd.s32 %s1479_s2, %s1473_s9 }
  0x2d   : > { %v2210_v4 = vld [vmem:[%s2207_s27 + $0x10] sm:$0xff]  ;;  %v2213_v5 = vld [vmem:[%s2207_s27 + $0x18] sm:$0xff]  ;;  %v2216_v6 = vld [vmem:[%s2207_s27 + $0x20] sm:$0xff]  ;;  %s354_s18 = scalar_select %p353_p8, 1, 0 }
  0x2e   : > { %v381_v7 = vrot.slane %v2210_v4, 1  ;;  %1637 = vmatprep.mubr.msk.f32.mxu0 %vm427_vm1, %v2210_v4  ;;  %v382_v8 = vrot.slane %v2213_v5, 1  ;;  %v384_v9 = vrot.slane %v2216_v6, 1  ;;  %v2226_v10 = vld [vmem:[%s2207_s27 + $0x28] sm:$0xff]  ;;  %v2229_v11 = vld [vmem:[%s2207_s27 + $0x30] sm:$0xff]  ;;  %v2232_v12 = vld [vmem:[%s2207_s27 + $0x38] sm:$0xff] }
  0x2f   : > { %1638 = vmatmul.mubr.msk.f32.vlgmr.msra.gmra.mxu0 %vm427_vm1, %v2213_v5  ;;  %v385_v13 = vrot.slane %v2226_v10, 1  ;;  %v387_v16 = vrot.slane %v2229_v11, 1  ;;  %v388_v17 = vrot.slane %v2232_v12, 1  ;;  %v2255_v19 = vld [vmem:[%s2207_s27 + $0x40] sm:$0xff]  ;;  %v2258_v20 = vld [vmem:[%s2207_s27 + $0x48] sm:$0xff]  ;;  %v2282_v25 = vld [vmem:[%s2207_s27 + $0x50] sm:$0xff]  ;;  %s355_s15 = scvt.s32.f32 %s354_s18 }
  0x30   : > { %1688 = vmatpush3.msk.msra.mxu0 %vm460_vm0, %v424_v1  ;;  %v2239_v14 = vsel %vm377_vm2, %v381_v7, %v382_v8  ;;  %1640 = vmatprep.mubr.msk.f32.mxu0 %vm427_vm1, %v2216_v6  ;;  %v2244_v15 = vsel %vm377_vm2, %v382_v8, 0.0  ;;  %v390_v23 = vrot.slane %v2255_v19, 1  ;;  %v391_v24 = vrot.slane %v2258_v20, 1  ;;  %v2285_v26 = vld [vmem:[%s2207_s27 + $0x58] sm:$0xff]  ;;  %s1481_s8 = sshll.u32 %s327_s7, 3  ;;  %v2306_v31 = vld [vmem:[%s2207_s27 + $0x60] sm:$0xff] }
  0x31   : > { %1663 = vmatprep.mubr.msk.f32.mxu1 %vm427_vm1, %v2239_v14  ;;  %v2252_v18 = vsel %vm377_vm2, %v384_v9, %v385_v13  ;;  %v2268_v21 = vsel %vm377_vm2, %v385_v13, 0.0  ;;  %v2275_v22 = vsel %vm377_vm2, %v387_v16, %v388_v17  ;;  %v2296_v27 = vsel %vm377_vm2, %v388_v17, 0.0  ;;  %v2309_v32 = vld [vmem:[%s2207_s27 + $0x68] sm:$0xff]  ;;  %s329_s10 = scalar_lea.vmem %s2800_s1, %s1481_s8  ;;  %v2327_v37 = vld [vmem:[%s2207_s27 + $0x70] sm:$0xff]  ;;  %v2330_v38 = vld [vmem:[%s2207_s27 + $0x78] sm:$0xff]  ;;  %s2801_s2 = sand.u32 1, %s1983_s19  }
  0x32   : > { %1664 = vmatmul.mubr.msk.f32.vlgmr.msra.gmra.mxu1 %vm427_vm1, %v2244_v15  ;;  %v2301_v28 = vsel %vm377_vm2, %v390_v23, %v391_v24  ;;  %v393_v29 = vrot.slane %v2282_v25, 1  ;;  %v394_v30 = vrot.slane %v2285_v26, 1  ;;  %v418_v33 = vsel %vm377_vm2, %v391_v24, 0.0  ;;  %v351_v39 = vld [vmem:[%s329_s10] sm:$0xff]  ;;  %v352_v41 = vld [vmem:[%s329_s10 + $0x8] sm:$0xff]  ;;  %s2545_s7 = scalar_lea.vmem [#allocation4], %s2801_s2  ;;  %s2802_s18 = smov %s2801_s2 }
  0x33   : > { %1714 = vmatpush3.msk.msra.mxu1 %vm460_vm0, %v964_v3  ;;  %1641 = vmatmul.mubr.msk.f32.gmra.mxu0 %vm427_vm1, %v2226_v10  ;;  %v396_v35 = vrot.slane %v2306_v31, 1  ;;  %v397_v36 = vrot.slane %v2309_v32, 1  ;;  %v356_v40 = vstv %s355_s15  ;;  %v399_v43 = vrot.slane %v2327_v37, 1  ;;  %v335_v48 = vld [vmem:[%s2207_s27] sm:$0xff]  ;;  %v336_v49 = vld [vmem:[%s2207_s27 + $0x8] sm:$0xff]  ;;  %s291_s27 = sand.u32 1, %s1995_s22  }
  0x34   : > { %1666 = vmatprep.mubr.msk.f32.mxu1 %vm427_vm1, %v2252_v18  ;;  %1643 = vmatprep.mubr.msk.f32.mxu0 %vm427_vm1, %v2229_v11  ;;  %v395_v34 = vsel %vm377_vm2, %v393_v29, %v394_v30  ;;  %v419_v42 = vsel %vm377_vm2, %v394_v30, 0.0  ;;  %v400_v45 = vrot.slane %v2330_v38, 1  ;;  %v357_v46 = vmul.f32 %v356_v40, %v351_v39  ;;  %s1470_s12 = sshll.u32 %s291_s27, 7  ;;  %s2549_s8 = scalar_lea.vmem [#allocation6], %s2802_s18 }
  0x35   : > { %v398_v44 = vsel %vm377_vm2, %v396_v35, %v397_v36  ;;  %v358_v47 = vmul.f32 %v356_v40, %v352_v41  ;;  %v420_v50 = vsel %vm377_vm2, %v397_v36, 0.0  ;;  %v378_v54 = vrot.slane %v335_v48, 1  ;;  %s2450_s13 = scalar_lea.vmem [#allocation2], %s1470_s12 }
  0x36   : > { %1667 = vmatmul.mubr.msk.f32.gmra.mxu1 %vm427_vm1, %v2268_v21  ;;  %v401_v51 = vsel %vm377_vm2, %v399_v43, %v400_v45  ;;  %v402_v52 = vrot.slane %v357_v46, 1  ;;  %v379_v55 = vrot.slane %v336_v49, 1  ;;  %v421_v56 = vsel %vm377_vm2, %v400_v45, 0.0 }
  0x37   : > { %1644 = vmatmul.mubr.msk.f32.gmra.mxu0 %vm427_vm1, %v2232_v12  ;;  %1669 = vmatprep.mubr.msk.f32.mxu1 %vm427_vm1, %v2275_v22  ;;  %v403_v53 = vrot.slane %v358_v47, 1 }
  0x38   : > { %1646 = vmatprep.mubr.msk.f32.mxu0 %vm427_vm1, %v2255_v19  ;;  %v380_v58 = vsel %vm377_vm2, %v378_v54, %v379_v55  ;;  %v414_v60 = vsel %vm377_vm2, %v379_v55, 0.0 }
  0x39   : > { %v404_v57 = vsel %vm377_vm2, %v402_v52, %v403_v53  ;;  %v422_v59 = vsel %vm377_vm2, %v403_v53, 0.0 }
  0x3a   : > { %1670 = vmatmul.mubr.msk.f32.gmra.mxu1 %vm427_vm1, %v2296_v27 }
  0x3b   : > { %1647 = vmatmul.mubr.msk.f32.gmra.mxu0 %vm427_vm1, %v2258_v20  ;;  %1672 = vmatprep.mubr.msk.f32.mxu1 %vm427_vm1, %v2301_v28 }
  0x3c   : > { %1649 = vmatprep.mubr.msk.f32.mxu0 %vm427_vm1, %v2282_v25 }
  0x3e   : > { %1673 = vmatmul.mubr.msk.f32.gmra.mxu1 %vm427_vm1, %v418_v33 }
  0x3f   : > { %1650 = vmatmul.mubr.msk.f32.gmra.mxu0 %vm427_vm1, %v2285_v26  ;;  %1675 = vmatprep.mubr.msk.f32.mxu1 %vm427_vm1, %v395_v34 }
  0x40   : > { %1652 = vmatprep.mubr.msk.f32.mxu0 %vm427_vm1, %v2306_v31 }
  0x42   : > { %1676 = vmatmul.mubr.msk.f32.gmra.mxu1 %vm427_vm1, %v419_v42 }
  0x43   : > { %1653 = vmatmul.mubr.msk.f32.gmra.mxu0 %vm427_vm1, %v2309_v32  ;;  %1678 = vmatprep.mubr.msk.f32.mxu1 %vm427_vm1, %v398_v44 }
  0x44   : > { %1655 = vmatprep.mubr.msk.f32.mxu0 %vm427_vm1, %v2327_v37 }
  0x46   : > { %1679 = vmatmul.mubr.msk.f32.gmra.mxu1 %vm427_vm1, %v420_v50 }
  0x47   : > { %1656 = vmatmul.mubr.msk.f32.gmra.mxu0 %vm427_vm1, %v2330_v38  ;;  %1681 = vmatprep.mubr.msk.f32.mxu1 %vm427_vm1, %v401_v51 }
  0x48   : > { %1658 = vmatprep.mubr.msk.f32.mxu0 %vm427_vm1, %v357_v46 }
  0x4a   : > { %1682 = vmatmul.mubr.msk.f32.gmra.mxu1 %vm427_vm1, %v421_v56 }
  0x4b   : > { %1659 = vmatmul.mubr.msk.f32.gmra.mxu0 %vm427_vm1, %v358_v47  ;;  %1684 = vmatprep.mubr.msk.f32.mxu1 %vm427_vm1, %v404_v57 }
  0x4c   : > { %1689 = vmatprep.mubr.msk.f32.mxu0 %vm427_vm1, %v380_v58 }
  0x4e   : > { %1685 = vmatmul.mubr.msk.f32.gmra.mxu1 %vm427_vm1, %v422_v59 }
  0x4f   : > { %1690 = vmatmul.mubr.msk.f32.vlgmr.msra.gmra.mxu0 %vm427_vm1, %v414_v60  ;;  %1715 = vmatprep.mubr.msk.f32.mxu1 %vm427_vm1, %v335_v48 }
  0x50   : > { %1692 = vmatprep.mubr.msk.f32.mxu0 %vm427_vm1, %v2239_v14 }
  0x52   : > { %1716 = vmatmul.mubr.msk.f32.vlgmr.msra.gmra.mxu1 %vm427_vm1, %v336_v49 }
  0x53   : > { %1693 = vmatmul.mubr.msk.f32.gmra.mxu0 %vm427_vm1, %v2244_v15  ;;  %1718 = vmatprep.mubr.msk.f32.mxu1 %vm427_vm1, %v2210_v4 }
  0x54   : > { %1695 = vmatprep.mubr.msk.f32.mxu0 %vm427_vm1, %v2252_v18 }
  0x56   : > { %1719 = vmatmul.mubr.msk.f32.gmra.mxu1 %vm427_vm1, %v2213_v5 }
  0x57   : > { %1696 = vmatmul.mubr.msk.f32.gmra.mxu0 %vm427_vm1, %v2268_v21  ;;  %1721 = vmatprep.mubr.msk.f32.mxu1 %vm427_vm1, %v2216_v6 }
  0x58   : > { %1698 = vmatprep.mubr.msk.f32.mxu0 %vm427_vm1, %v2275_v22 }
  0x5a   : > { %1722 = vmatmul.mubr.msk.f32.gmra.mxu1 %vm427_vm1, %v2226_v10 }
  0x5b   : > { %1699 = vmatmul.mubr.msk.f32.gmra.mxu0 %vm427_vm1, %v2296_v27  ;;  %1724 = vmatprep.mubr.msk.f32.mxu1 %vm427_vm1, %v2229_v11 }
  0x5c   : > { %1701 = vmatprep.mubr.msk.f32.mxu0 %vm427_vm1, %v2301_v28 }
  0x5e   : > { %1725 = vmatmul.mubr.msk.f32.gmra.mxu1 %vm427_vm1, %v2232_v12 }
  0x5f   : > { %1702 = vmatmul.mubr.msk.f32.gmra.mxu0 %vm427_vm1, %v418_v33  ;;  %1727 = vmatprep.mubr.msk.f32.mxu1 %vm427_vm1, %v2255_v19 }
  0x60   : > { %1704 = vmatprep.mubr.msk.f32.mxu0 %vm427_vm1, %v395_v34 }
  0x62   : > { %1728 = vmatmul.mubr.msk.f32.gmra.mxu1 %vm427_vm1, %v2258_v20 }
  0x63   : > { %1705 = vmatmul.mubr.msk.f32.gmra.mxu0 %vm427_vm1, %v419_v42  ;;  %1730 = vmatprep.mubr.msk.f32.mxu1 %vm427_vm1, %v2282_v25 }
  0x64   : > { %1707 = vmatprep.mubr.msk.f32.mxu0 %vm427_vm1, %v398_v44 }
  0x66   : > { %1731 = vmatmul.mubr.msk.f32.gmra.mxu1 %vm427_vm1, %v2285_v26 }
  0x67   : > { %1708 = vmatmul.mubr.msk.f32.gmra.mxu0 %vm427_vm1, %v420_v50  ;;  %1733 = vmatprep.mubr.msk.f32.mxu1 %vm427_vm1, %v2306_v31 }
  0x68   : > { %1710 = vmatprep.mubr.msk.f32.mxu0 %vm427_vm1, %v401_v51 }
  0x6a   : > { %1734 = vmatmul.mubr.msk.f32.gmra.mxu1 %vm427_vm1, %v2309_v32 }
  0x6b   : > { %1711 = vmatmul.mubr.msk.f32.gmra.mxu0 %vm427_vm1, %v421_v56  ;;  %1736 = vmatprep.mubr.msk.f32.mxu1 %vm427_vm1, %v2327_v37 }
  0x6e   : > { %1737 = vmatmul.mubr.msk.f32.gmra.mxu1 %vm427_vm1, %v2330_v38 }
  0xef   : > { %v1639_v61 = vpop.f32.mrf.mxu0 }
  0xf1   : > { %v529_v62 = vpop.f32.mrf.mxu0 }
  0xf2   : > { %v1665_v63 = vpop.f32.mrf.mxu1 }
  0xf3   : > { %v1642_v0 = vpop.f32.mrf.mxu0  ;;  %v722_v27 = vadd.f32 %v1665_v63, %v1639_v61 }
  0xf4   : > { %v716_v1 = vpop.f32.mrf.mxu1 }
  0xf5   : > { %v539_v2 = vpop.f32.mrf.mxu0  ;;  %v717_v30 = vadd.f32 %v716_v1, %v529_v62 }
  0xf6   : > { %v1668_v3 = vpop.f32.mrf.mxu1 }
  0xf7   : > { %v1645_v4 = vpop.f32.mrf.mxu0  ;;  %v732_v34 = vadd.f32 %v1668_v3, %v1642_v0 }
  0xf8   : > { %v726_v5 = vpop.f32.mrf.mxu1 }
  0xf9   : > { %v549_v6 = vpop.f32.mrf.mxu0  ;;  %v727_v39 = vadd.f32 %v726_v5, %v539_v2 }
  0xfa   : > { %v1671_v7 = vpop.f32.mrf.mxu1 }
  0xfb   : > { %v1648_v8 = vpop.f32.mrf.mxu0  ;;  %v742_v44 = vadd.f32 %v1671_v7, %v1645_v4 }
  0xfc   : > { %v736_v9 = vpop.f32.mrf.mxu1 }
  0xfd   : > { %v559_v10 = vpop.f32.mrf.mxu0  ;;  %v737_v49 = vadd.f32 %v736_v9, %v549_v6 }
  0xfe   : > { %v1674_v11 = vpop.f32.mrf.mxu1 }
  0xff   : > { %v1651_v12 = vpop.f32.mrf.mxu0  ;;  %v752_v54 = vadd.f32 %v1674_v11, %v1648_v8 }
 0x100   : > { %v746_v13 = vpop.f32.mrf.mxu1 }
 0x101   : > { %v2419_v14 = vpop.f32.mrf.mxu0  ;;  %v747_v59 = vadd.f32 %v746_v13, %v559_v10 }
 0x102   : > { %v1677_v15 = vpop.f32.mrf.mxu1 }
 0x103   : > { %v2421_v16 = vpop.f32.mrf.mxu0  ;;  %v762_v0 = vadd.f32 %v1677_v15, %v1651_v12 }
 0x104   : > { %v756_v17 = vpop.f32.mrf.mxu1 }
 0x105   : > { %v2423_v18 = vpop.f32.mrf.mxu0  ;;  %v757_v5 = vadd.f32 %v756_v17, %v2419_v14 }
 0x106   : > { %v2425_v19 = vpop.f32.mrf.mxu1 }
 0x107   : > { %v2427_v20 = vpop.f32.mrf.mxu0  ;;  %v772_v10 = vadd.f32 %v2425_v19, %v2421_v16 }
 0x108   : > { %v2429_v21 = vpop.f32.mrf.mxu1 }
 0x109   : > { %v2431_v22 = vpop.f32.mrf.mxu0  ;;  %v767_v15 = vadd.f32 %v2429_v21, %v2423_v18 }
 0x10a   : > { %v2433_v23 = vpop.f32.mrf.mxu1 }
 0x10b   : > { %v2435_v24 = vpop.f32.mrf.mxu0  ;;  %v782_v19 = vadd.f32 %v2433_v23, %v2427_v20 }
 0x10c   : > { %v2437_v25 = vpop.f32.mrf.mxu1 }
 0x10d   : > { %v2440_v26 = vpop.f32.mrf.mxu0  ;;  %v777_v21 = vadd.f32 %v2437_v25, %v2431_v22 }
 0x10e   : > { %v2442_v28 = vpop.f32.mrf.mxu1 }
 0x10f   : > { %v1691_v29 = vpop.f32.mrf.mxu0  ;;  %v792_v23 = vadd.f32 %v2442_v28, %v2435_v24 }
 0x110   : > { %v949_v31 = vadd.f32 %v1691_v29, %v722_v27  ;;  %v2446_v32 = vpop.f32.mrf.mxu1 }
 0x111   : > { %v869_v33 = vpop.f32.mrf.mxu0 }
 0x112   : > { %v948_v35 = vadd.f32 %v869_v33, %v717_v30  ;;  %v1717_v36 = vpop.f32.mrf.mxu1 }
 0x113   : > { %v2448_v37 = vadd.f32 %v1717_v36, %v949_v31  ;;  %v1694_v38 = vpop.f32.mrf.mxu0 }
 0x114   : > { %v951_v40 = vadd.f32 %v1694_v38, %v732_v34  ;;  %v1037_v41 = vpop.f32.mrf.mxu1 }
 0x115   : > { %1134 = vst.msk [vmem:[%s2450_s13 + $0x8] sm:$0xff] %vm1132_vm3, %v2448_v37  ;;  %v2455_v42 = vadd.f32 %v1037_v41, %v948_v35  ;;  %v879_v43 = vpop.f32.mrf.mxu0 }
 0x116   : > { %v950_v45 = vadd.f32 %v879_v43, %v727_v39  ;;  %v1720_v46 = vpop.f32.mrf.mxu1 }
 0x117   : > { %1133 = vst.msk [vmem:[%s2450_s13] sm:$0xff] %vm1132_vm3, %v2455_v42  ;;  %v2460_v47 = vadd.f32 %v1720_v46, %v951_v40  ;;  %v1697_v48 = vpop.f32.mrf.mxu0  ;;  %v787_v40 = vadd.f32 %v2446_v32, %v2440_v26 }
 0x118   : > { %v953_v50 = vadd.f32 %v1697_v48, %v742_v44  ;;  %v1047_v51 = vpop.f32.mrf.mxu1 }
 0x119   : > { %1136 = vst.msk [vmem:[%s2450_s13 + $0x18] sm:$0xff] %vm1132_vm3, %v2460_v47  ;;  %v2465_v52 = vadd.f32 %v1047_v51, %v950_v45  ;;  %v889_v53 = vpop.f32.mrf.mxu0 }
 0x11a   : > { %v952_v55 = vadd.f32 %v889_v53, %v737_v49  ;;  %v1723_v56 = vpop.f32.mrf.mxu1 }
 0x11b   : > { %1135 = vst.msk [vmem:[%s2450_s13 + $0x10] sm:$0xff] %vm1132_vm3, %v2465_v52  ;;  %v2470_v57 = vadd.f32 %v1723_v56, %v953_v50  ;;  %v1700_v58 = vpop.f32.mrf.mxu0 }
 0x11c   : > { %v955_v60 = vadd.f32 %v1700_v58, %v752_v54  ;;  %v1057_v61 = vpop.f32.mrf.mxu1 }
 0x11d   : > { %1138 = vst.msk [vmem:[%s2450_s13 + $0x28] sm:$0xff] %vm1132_vm3, %v2470_v57  ;;  %v2475_v62 = vadd.f32 %v1057_v61, %v952_v55  ;;  %v899_v63 = vpop.f32.mrf.mxu0 }
 0x11e   : > { %v954_v1 = vadd.f32 %v899_v63, %v747_v59  ;;  %v1726_v2 = vpop.f32.mrf.mxu1 }
 0x11f   : > { %1137 = vst.msk [vmem:[%s2450_s13 + $0x20] sm:$0xff] %vm1132_vm3, %v2475_v62  ;;  %v2480_v3 = vadd.f32 %v1726_v2, %v955_v60  ;;  %v1703_v4 = vpop.f32.mrf.mxu0 }
 0x120   : > { %v957_v6 = vadd.f32 %v1703_v4, %v762_v0  ;;  %v1067_v7 = vpop.f32.mrf.mxu1 }
 0x121   : > { %1140 = vst.msk [vmem:[%s2450_s13 + $0x38] sm:$0xff] %vm1132_vm3, %v2480_v3  ;;  %v2486_v8 = vadd.f32 %v1067_v7, %v954_v1  ;;  %v909_v9 = vpop.f32.mrf.mxu0 }
 0x122   : > { %v956_v11 = vadd.f32 %v909_v9, %v757_v5  ;;  %v1729_v12 = vpop.f32.mrf.mxu1 }
 0x123   : > { %1139 = vst.msk [vmem:[%s2450_s13 + $0x30] sm:$0xff] %vm1132_vm3, %v2486_v8  ;;  %v2493_v13 = vadd.f32 %v1729_v12, %v957_v6  ;;  %v1706_v14 = vpop.f32.mrf.mxu0 }
 0x124   : > { %v959_v17 = vadd.f32 %v1706_v14, %v772_v10  ;;  %v1077_v27 = vpop.f32.mrf.mxu1 }
 0x125   : > { %1142 = vst.msk [vmem:[%s2450_s13 + $0x48] sm:$0xff] %vm1132_vm3, %v2493_v13  ;;  %v2500_v29 = vadd.f32 %v1077_v27, %v956_v11  ;;  %v919_v16 = vpop.f32.mrf.mxu0 }
 0x126   : > { %v958_v30 = vadd.f32 %v919_v16, %v767_v15  ;;  %v1732_v31 = vpop.f32.mrf.mxu1 }
 0x127   : > { %1141 = vst.msk [vmem:[%s2450_s13 + $0x40] sm:$0xff] %vm1132_vm3, %v2500_v29  ;;  %v2507_v33 = vadd.f32 %v1732_v31, %v959_v17  ;;  %v1709_v18 = vpop.f32.mrf.mxu0 }
 0x128   : > { %v961_v34 = vadd.f32 %v1709_v18, %v782_v19  ;;  %v1087_v35 = vpop.f32.mrf.mxu1 }
 0x129   : > { %1144 = vst.msk [vmem:[%s2450_s13 + $0x58] sm:$0xff] %vm1132_vm3, %v2507_v33  ;;  %v2514_v36 = vadd.f32 %v1087_v35, %v958_v30  ;;  %v929_v20 = vpop.f32.mrf.mxu0 }
 0x12a   : > { %v960_v38 = vadd.f32 %v929_v20, %v777_v21  ;;  %v1735_v39 = vpop.f32.mrf.mxu1 }
 0x12b   : > { %1143 = vst.msk [vmem:[%s2450_s13 + $0x50] sm:$0xff] %vm1132_vm3, %v2514_v36  ;;  %v2521_v22 = vadd.f32 %v1735_v39, %v961_v34  ;;  %v1712_v25 = vpop.f32.mrf.mxu0 }
 0x12c   : > { %v963_v41 = vadd.f32 %v1712_v25, %v792_v23  ;;  %v1097_v43 = vpop.f32.mrf.mxu1 }
 0x12d   : > { %1146 = vst.msk [vmem:[%s2450_s13 + $0x68] sm:$0xff] %vm1132_vm3, %v2521_v22  ;;  %v2528_v24 = vadd.f32 %v1097_v43, %v960_v38  ;;  %v939_v28 = vpop.f32.mrf.mxu0 }
 0x12e   : > { %v962_v44 = vadd.f32 %v939_v28, %v787_v40  ;;  %v1738_v45 = vpop.f32.mrf.mxu1 }
 0x12f   : > { %1145 = vst.msk [vmem:[%s2450_s13 + $0x60] sm:$0xff] %vm1132_vm3, %v2528_v24  ;;  %v2533_v46 = vadd.f32 %v1738_v45, %v963_v41  ;;  %1152 = sbr.rel (%p1550_p9) target bundleno = 310 (0x136), region = 36 }
 0x130   : > { %v1107_v48 = vpop.f32.mrf.mxu1 }
 0x131   : > { %1148 = vst.msk [vmem:[%s2450_s13 + $0x78] sm:$0xff] %vm1132_vm3, %v2533_v46  ;;  %v2538_v26 = vadd.f32 %v1107_v48, %v962_v44 }
 0x133   : > { %1147 = vst.msk [vmem:[%s2450_s13 + $0x70] sm:$0xff] %vm1132_vm3, %v2538_v26 }
 0x134   : > { %vm1153_vm4 = vcmask 253952   ;;  %v2021_v32 = vmov 0.0  }
 0x135   : > { %1154 = vst.msk [vmem:[%s2545_s7] sm:$0x1] %vm1153_vm4, %v2021_v32  ;;  %1155 = vst.msk [vmem:[%s2549_s8] sm:$0x1] %vm1153_vm4, %v2021_v32 }
 0x136 PF: > { %v1157_v49 = vsel %vm1132_vm3, %v2455_v42, 0.0  ;;  %v1158_v50 = vsel %vm1132_vm3, %v2448_v37, 0.0  ;;  %v1160_v51 = vsel %vm1132_vm3, %v2465_v52, 0.0  ;;  %v1162_v54 = vsel %vm1132_vm3, %v2460_v47, 0.0  ;;  %s1566_s15 = sshll.u32 %s2003_s24, 4  ;;  %s1554_s16 = sshll.u32 %s2007_s25, 5 }
 0x137   : > { %v1159_v53 = vadd.f32 %v1158_v50, %v1157_v49  ;;  %v1164_v56 = vsel %vm1132_vm3, %v2475_v62, 0.0  ;;  %v1198_v59 = vmul.f32 %v2455_v42, %v2455_v42  ;;  %v1199_v60 = vmul.f32 %v2448_v37, %v2448_v37  ;;  %s1278_s9 = sshll.u32 %s2450_s13, 4  ;;  %s1275_s10 = sadd.s32 %s1566_s15, %s1554_s16  ;;  %s2577_s9 = int_to_ptr.vmem [resolvable:$true] %s1278_s9 }
 0x138   : > { %v1166_v61 = vsel %vm1132_vm3, %v2470_v57, 0.0  ;;  %v1200_v63 = vmul.f32 %v2465_v52, %v2465_v52  ;;  %v1201_v1 = vmul.f32 %v2460_v47, %v2460_v47  ;;  %v1168_v37 = vsel %vm1132_vm3, %v2486_v8, 0.0  ;;  %s1555_s24 = sshll.u32 %s1275_s10, 7  ;;  %s2595_s18 = scalar_lea.sflag [#allocation3], %s291_s27 }
 0x139   : > { %v1161_v55 = vadd.f32 %v1160_v51, %v1159_v53  ;;  %v1202_v52 = vmul.f32 %v2475_v62, %v2475_v62  ;;  %v1214_v2 = vsel %vm1132_vm3, %v1198_v59, 0.0  ;;  %v1215_v4 = vsel %vm1132_vm3, %v1199_v60, 0.0  ;;  %s2588_s2 = scalar_lea.hbm %s2777_s3, %s1555_s24  ;;  %s1847_s15 = scalar_lea.vmem %s2577_s9, 2048 }
 0x13a   : > { %v1170_v47 = vsel %vm1132_vm3, %v2480_v3, 0.0  ;;  %v1216_v5 = vadd.f32 %v1215_v4, %v1214_v2  ;;  %v1217_v6 = vsel %vm1132_vm3, %v1200_v63, 0.0  ;;  %p1848_p10 = scmp.ne.s32.totalorder %s2577_s9, %s1847_s15  ;;  %s2022_s16 = smov [#allocation2]  }
 0x13b   : > { %v1163_v58 = vadd.f32 %v1162_v54, %v1161_v55  ;;  %s1851_s10 = sshll.u32 %s2022_s16, 4  ;;  %s1852_s10 = int_to_ptr.vmem [resolvable:$false] %s1851_s10 }
 0x13c   : > { %p1849_p11 = pnand %p1848_p10, %p2132_p3  ;;  %s1853_s12 = scalar_lea.vmem %s1852_s10, 4096 }
 0x13d   : > { %v1165_v0 = vadd.f32 %v1164_v56, %v1163_v58  ;;  %p1854_p1 = scmp.lt.s32.totalorder %s2577_s9, %s1852_s10  ;;  %p1855_p4 = scmp.lt.s32.totalorder %s1853_s12, %s1847_s15 }
 0x13e   : > { %p1850_p0 = pneg %p1849_p11 }
 0x13f   : > { %v1167_v42 = vadd.f32 %v1166_v61, %v1165_v0  ;;  %p1856_p2 = por %p1855_p4, %p1854_p1 }
 0x141   : > { %p1857_p5 = pnand %p1856_p2, %p1850_p0 }
 0x143   : > { %1860 = shalt.err (!%p1857_p5)
}
 0x144   : > { %s1861_s27 = scalar_lea.hbm %s2588_s2, 2048  ;;  %s1865_s16 = scalar_lea.hbm %s2777_s3, 8192 }
 0x145   : > { %p1862_p6 = scmp.ne.s32.totalorder %s2588_s2, %s1861_s27  ;;  %p1866_p10 = scmp.lt.s32.totalorder %s2588_s2, %s2777_s3 }
 0x146   : > { %p1867_p11 = scmp.lt.s32.totalorder %s1865_s16, %s1861_s27 }
 0x147   : > { %p1863_p8 = pnand %p1862_p6, %p2132_p3 }
 0x148   : > { %p1868_p0 = por %p1867_p11, %p1866_p10 }
 0x149   : > { %p1864_p9 = pneg %p1863_p8 }
 0x14b   : > { %p1869_p1 = pnand %p1868_p0, %p1864_p9 }
 0x14d   : > { %1872 = shalt.err (!%p1869_p1)
}
 0x14e   : > { %s2023_s15 = smov 128   ;;  %s2024_s10 = smov 8   ;;  %v1169_v62 = vadd.f32 %v1168_v37, %v1167_v42  ;;  %v1203_v7 = vmul.f32 %v2470_v57, %v2470_v57  ;;  %v1219_v9 = vsel %vm1132_vm3, %v1201_v1, 0.0  ;;  %v1172_v10 = vsel %vm1132_vm3, %v2500_v29, 0.0 }
 0x14f   : > { %1739 = dma.vmem_to_hbm [thread:$0]  (%p2132_p3), %s2577_s9, 2048, %s2588_s2, %s2595_s18, %s2023_s15, %s2023_s15, %s2024_s10   ;;  %v1218_v11 = vadd.f32 %v1217_v6, %v1216_v5  ;;  %v1204_v14 = vmul.f32 %v2486_v8, %v2486_v8  ;;  %v1221_v15 = vsel %vm1132_vm3, %v1202_v52, 0.0  ;;  %v1174_v17 = vsel %vm1132_vm3, %v2493_v13, 0.0 }
 0x150   : > { %v1171_v12 = vadd.f32 %v1170_v47, %v1169_v62  ;;  %v1205_v57 = vmul.f32 %v2480_v3, %v2480_v3  ;;  %v1223_v19 = vsel %vm1132_vm3, %v1203_v7, 0.0  ;;  %v1176_v30 = vsel %vm1132_vm3, %v2514_v36, 0.0  ;;  %s2803_s0 = sadd.s32 4294967295, %s2019_s28   ;;  %s1556_s11 = sshll.u32 %s2007_s25, 4 }
 0x151   : > { %v1220_v27 = vadd.f32 %v1219_v9, %v1218_v11  ;;  %v1206_v8 = vmul.f32 %v2500_v29, %v2500_v29  ;;  %v1225_v21 = vsel %vm1132_vm3, %v1204_v14, 0.0  ;;  %v1178_v34 = vsel %vm1132_vm3, %v2507_v33, 0.0  ;;  %s2671_s1 = sand.u32 1, %s2803_s0   ;;  %s1294_s9 = sshll.u32 %s2545_s7, 4  ;;  %s2683_s9 = int_to_ptr.vmem [resolvable:$true] %s1294_s9 }
 0x152   : > { %v1173_v16 = vadd.f32 %v1172_v10, %v1171_v12  ;;  %v1207_v3 = vmul.f32 %v2493_v13, %v2493_v13  ;;  %v1227_v23 = vsel %vm1132_vm3, %v1205_v57, 0.0  ;;  %v1180_v38 = vsel %vm1132_vm3, %v2528_v24, 0.0  ;;  %s2681_s12 = scalar_lea.hbm %s2778_s4, %s1556_s11  ;;  %s1259_s27 = scalar_lea.sflag [#allocation5], %s2671_s1 }
 0x153   : > { %v1222_v31 = vadd.f32 %v1221_v15, %v1220_v27  ;;  %v1208_v29 = vmul.f32 %v2514_v36, %v2514_v36  ;;  %v1229_v40 = vsel %vm1132_vm3, %v1206_v8, 0.0  ;;  %v1182_v41 = vsel %vm1132_vm3, %v2521_v22, 0.0  ;;  %s1873_s24 = scalar_lea.vmem %s2683_s9, 16  ;;  %s2025_s13 = smov [#allocation4]  }
 0x154   : > { %v1175_v18 = vadd.f32 %v1174_v17, %v1173_v16  ;;  %v1209_v13 = vmul.f32 %v2507_v33, %v2507_v33  ;;  %v1231_v44 = vsel %vm1132_vm3, %v1207_v3, 0.0  ;;  %v1184_v45 = vsel %vm1132_vm3, %v2538_v26, 0.0  ;;  %p1874_p3 = scmp.ne.s32.totalorder %s2683_s9, %s1873_s24  ;;  %s1877_s16 = sshll.u32 %s2025_s13, 4  ;;  %s1878_s16 = int_to_ptr.vmem [resolvable:$false] %s1877_s16 }
 0x155   : > { %v1224_v35 = vadd.f32 %v1223_v19, %v1222_v31  ;;  %v1210_v36 = vmul.f32 %v2528_v24, %v2528_v24  ;;  %v1233_v49 = vsel %vm1132_vm3, %v1208_v29, 0.0  ;;  %v1186_v50 = vsel %vm1132_vm3, %v2533_v46, 0.0  ;;  %s1879_s15 = scalar_lea.vmem %s1878_s16, 32  ;;  %p1880_p5 = scmp.lt.s32.totalorder %s2683_s9, %s1878_s16 }
 0x156   : > { %v1177_v20 = vadd.f32 %v1176_v30, %v1175_v18  ;;  %v1211_v33 = vmul.f32 %v2521_v22, %v2521_v22  ;;  %v1235_v54 = vsel %vm1132_vm3, %v1209_v13, 0.0  ;;  %v1212_v58 = vmul.f32 %v2538_v26, %v2538_v26  ;;  %p1875_p4 = pnand %p1874_p3, %p2161_p12  ;;  %p1881_p6 = scmp.lt.s32.totalorder %s1879_s15, %s1873_s24 }
 0x157   : > { %v1226_v39 = vadd.f32 %v1225_v21, %v1224_v35  ;;  %v1237_v24 = vsel %vm1132_vm3, %v1210_v36, 0.0  ;;  %v1213_v61 = vmul.f32 %v2533_v46, %v2533_v46  ;;  %v1156_v46 = vld [vmem:[%s2545_s7] sm:$0x1]  ;;  %vm1195_vm5 = vcmask 253952  }
 0x158   : > { %v1179_v25 = vadd.f32 %v1178_v34, %v1177_v20  ;;  %v1239_v22 = vsel %vm1132_vm3, %v1211_v33, 0.0  ;;  %v1241_v1 = vsel %vm1132_vm3, %v1212_v58, 0.0  ;;  %p1876_p2 = pneg %p1875_p4  ;;  %p1882_p8 = por %p1881_p6, %p1880_p5 }
 0x159   : > { %v1228_v43 = vadd.f32 %v1227_v23, %v1226_v39  ;;  %v1243_v42 = vsel %vm1132_vm3, %v1213_v61, 0.0 }
 0x15a   : > { %v1181_v28 = vadd.f32 %v1180_v38, %v1179_v25  ;;  %p1883_p9 = pnand %p1882_p8, %p1876_p2 }
 0x15b   : > { %v1230_v48 = vadd.f32 %v1229_v40, %v1228_v43 }
 0x15c   : > { %v1183_v32 = vadd.f32 %v1182_v41, %v1181_v28 }
 0x15d   : > { %v1232_v51 = vadd.f32 %v1231_v44, %v1230_v48 }
 0x15e   : > { %v1185_v53 = vadd.f32 %v1184_v45, %v1183_v32 }
 0x15f   : > { %v1234_v55 = vadd.f32 %v1233_v49, %v1232_v51 }
 0x160   : > { %v1187_v56 = vadd.f32 %v1186_v50, %v1185_v53 }
 0x161   : > { %v1236_v59 = vadd.f32 %v1235_v54, %v1234_v55 }
 0x162   : > { %v1188_v60 = vrot.slane %v1187_v56, 4 }
 0x163   : > { %v1238_v63 = vadd.f32 %v1237_v24, %v1236_v59 }
 0x164   : > { %v1189_v0 = vadd.f32 %v1188_v60, %v1187_v56 }
 0x165   : > { %v1240_v37 = vadd.f32 %v1239_v22, %v1238_v63 }
 0x166   : > { %v1190_v26 = vrot.slane %v1189_v0, 2 }
 0x167   : > { %v1242_v52 = vadd.f32 %v1241_v1, %v1240_v37 }
 0x168   : > { %v1191_v2 = vadd.f32 %v1190_v26, %v1189_v0 }
 0x169   : > { %v1244_v4 = vadd.f32 %v1243_v42, %v1242_v52 }
 0x16a   : > { %v1192_v47 = vrot.slane %v1191_v2, 1 }
 0x16b   : > { %v1245_v5 = vrot.slane %v1244_v4, 4 }
 0x16c   : > { %v1193_v6 = vadd.f32 %v1192_v47, %v1191_v2 }
 0x16d   : > { %v1246_v62 = vadd.f32 %v1245_v5, %v1244_v4 }
 0x16e   : > { %v1194_v7 = vadd.f32 %v1193_v6, %v1156_v46 }
 0x16f   : > { %v1247_v9 = vrot.slane %v1246_v62, 2 }
 0x170   : > { %1196 = vst.msk [vmem:[%s2545_s7] sm:$0x1] %vm1195_vm5, %v1194_v7 }
 0x171   : > { %v1248_v10 = vadd.f32 %v1247_v9, %v1246_v62 }
 0x172   : > { %1886 = shalt.err (!%p1883_p9)
}
 0x173   : > { %s1887_s7 = scalar_lea.hbm %s2681_s12, 16  ;;  %s1891_s2 = scalar_lea.hbm %s2778_s4, 32 }
 0x174   : > { %p1888_p10 = scmp.ne.s32.totalorder %s2681_s12, %s1887_s7  ;;  %p1892_p1 = scmp.lt.s32.totalorder %s2681_s12, %s2778_s4 }
 0x175   : > { %p1893_p3 = scmp.lt.s32.totalorder %s1891_s2, %s1887_s7 }
 0x176   : > { %p1889_p11 = pnand %p1888_p10, %p2161_p12 }
 0x177   : > { %p1894_p4 = por %p1893_p3, %p1892_p1 }
 0x178   : > { %p1890_p0 = pneg %p1889_p11 }
 0x17a   : > { %p1895_p2 = pnand %p1894_p4, %p1890_p0 }
 0x17c   : > { %1898 = shalt.err (!%p1895_p2)
}
 0x17d   : > { %1740 = dma.vmem_to_hbm [thread:$0]  (%p2161_p12), %s2683_s9, 16, %s2681_s12, %s1259_s27   ;;  %v1249_v11 = vrot.slane %v1248_v10, 1  ;;  %v1197_v12 = vld [vmem:[%s2549_s8] sm:$0x1] }
 0x17e   : > { %s1307_s24 = sshll.u32 %s2549_s8, 4  ;;  %s1305_s7 = scalar_lea.hbm %s2779_s5, %s1556_s11  ;;  %s1308_s24 = int_to_ptr.vmem [resolvable:$true] %s1307_s24 }
 0x17f   : > { %v1250_v14 = vadd.f32 %v1249_v11, %v1248_v10  ;;  %s1899_s10 = scalar_lea.vmem %s1308_s24, 16  ;;  %s2026_s0 = smov [#allocation6]  }
 0x180   : > { %p1900_p5 = scmp.ne.s32.totalorder %s1308_s24, %s1899_s10  ;;  %s1903_s9 = sshll.u32 %s2026_s0, 4  ;;  %s1904_s9 = int_to_ptr.vmem [resolvable:$false] %s1903_s9 }
 0x181   : > { %v1251_v15 = vadd.f32 %v1250_v14, %v1197_v12  ;;  %s1905_s12 = scalar_lea.vmem %s1904_s9, 32  ;;  %p1906_p9 = scmp.lt.s32.totalorder %s1308_s24, %s1904_s9 }
 0x182   : > { %p1901_p6 = pnand %p1900_p5, %p2161_p12  ;;  %p1907_p10 = scmp.lt.s32.totalorder %s1905_s12, %s1899_s10 }
 0x183   : > { %1252 = vst.msk [vmem:[%s2549_s8] sm:$0x1] %vm1195_vm5, %v1251_v15 }
 0x184   : > { %p1902_p8 = pneg %p1901_p6  ;;  %p1908_p11 = por %p1907_p10, %p1906_p9 }
 0x186   : > { %p1909_p0 = pnand %p1908_p11, %p1902_p8 }
 0x188   : > { %1912 = shalt.err (!%p1909_p0)
}
 0x189   : > { %s1913_s25 = scalar_lea.hbm %s1305_s7, 16  ;;  %s1917_s2 = scalar_lea.hbm %s2779_s5, 32 }
 0x18a   : > { %p1914_p1 = scmp.ne.s32.totalorder %s1305_s7, %s1913_s25  ;;  %p1918_p2 = scmp.lt.s32.totalorder %s1305_s7, %s2779_s5 }
 0x18b   : > { %p1919_p5 = scmp.lt.s32.totalorder %s1917_s2, %s1913_s25 }
 0x18c   : > { %p1915_p3 = pnand %p1914_p1, %p2161_p12 }
 0x18d   : > { %p1920_p6 = por %p1919_p5, %p1918_p2 }
 0x18e   : > { %p1916_p4 = pneg %p1915_p3 }
 0x190   : > { %p1921_p13 = pnand %p1920_p6, %p1916_p4 }
 0x192   : > { %1924 = shalt.err (!%p1921_p13)
}
 0x193   : > { %1741 = dma.vmem_to_hbm [thread:$0]  (%p2161_p12), %s1308_s24, 16, %s1305_s7, %s1259_s27  }
 0x194 PF: > { %p1755_p8 = scmp.ge.s32.totalorder %s2019_s28, 2  ;;  %s1319_s16 = sand.u32 1, %s1991_s21  }
 0x195   : > { %s1320_s15 = scalar_lea.sflag [#allocation3], %s1319_s16 }
 0x196   : > { %p1746_p9 = pnand %p1755_p8, %p2149_p7 }
 0x198   : > { %p1747_p10 = pneg %p1746_p9 }
 0x19a   : > { %1970 = dma.done.wait (%p1747_p10), %s1320_s15, 2048  }
 0x19b   : > { %1972 = vsyncadd (%p1747_p10), %s1320_s15, 4294965248  ;;  %s2804_s10 = sadd.s32 4294967294, %s2019_s28   ;;  %p2805_p13 = scmp.ne.s32.totalorder %s2796_s6, 0 }
 0x19c   : > { %s1328_s0 = sand.u32 1, %s2804_s10  }
 0x19d   : > { %p1749_p11 = pnand %p1755_p8, %p2805_p13  ;;  %s1329_s17 = scalar_lea.sflag [#allocation5], %s1328_s0 }
 0x19f   : > { %p1750_p0 = pneg %p1749_p11 }
 0x1a1   : > { %1974 = dma.done.wait (%p1750_p0), %s1329_s17, 32  }
 0x1a2   : > { %1976 = vsyncadd (%p1750_p0), %s1329_s17, 4294967264  ;;  %s22_s28 = sadd.s32 1, %s2019_s28   ;;  %s2806_s25 = sld [smem:[#allocation9_spill]] }
 0x1a3   : > { %p19_p12 = scmp.ge.s32.totalorder %s22_s28, 6   ;;  %s2807_s14 = sld [smem:[#allocation10_spill]] }
 0x1a4   : > { %s2808_s27 = sld [smem:[#allocation11_spill]]  ;;  %s2809_s18 = smov %s1983_s19 }
 0x1a5   : > { %s2810_s19 = smov %s1987_s20  ;;  %s2811_s20 = smov %s2166_s30 }
 0x1a6   : > { %s2812_s21 = smov %s1995_s22  ;;  %s2813_s22 = smov %s1999_s23 }
 0x1a7   : > { %s2814_s23 = smov %s2169_s29  ;;  %s2815_s24 = smov %s2011_s26 }
 0x1a8   :  { %21 = sbr.rel (!%p19_p12) target bundleno = 13 (0xd), region = 106 }
 0x1a9   : > { %s2816_s26 = smov %s2807_s14 }
 0x1ad   :  { %1341 = vsyncpa [#allocation3], 1 }
 0x1ae   :  { %1343 = vsyncpa [#allocation3 + $0x1], 1 }
 0x1af   :  { %1344 = vsyncpa [#allocation5], 1 }
 0x1b0   :  { %1346 = vsyncpa [#allocation5 + $0x1], 1 }

</bundles_post_ra>
